<compile_context>
chip_gen: v5e
topology: v5e:2x2
jax: 0.10.0
libtpu: 0.0.40
codegen_flags: <defaults>
</compile_context>

<pallas_src>
import functools

import jax
import jax.numpy as jnp
from jax.experimental import pallas as pl
from jax.experimental.pallas import tpu as pltpu

# ---- lane-dense, MXU-friendly layout constants ----
LANE = 128      # all feature dims (c_in=4, c_hidden=32, c_out=3) zero-padded to this lane width
G_PAD = 8       # graph (batch) dim padded to one sublane group


def _round_up(x, m):
    return ((x + m - 1) // m) * m


def _vmem_limit_bytes():
    # ~3/4 of physical VMEM, capped at 100 MiB: ~96 MiB on v5e/v6e, ~48 MiB on v7x.
    try:
        cap = int(pltpu.get_tpu_info().vmem_capacity_bytes)
    except Exception:
        cap = 0
    if cap <= 0:
        return 48 * 1024 * 1024
    return min((cap * 3) // 4, 100 * 1024 * 1024)


_VMEM_LIMIT = _vmem_limit_bytes()


def _pick_row_tile(n_pad):
    # Largest row tile dividing n_pad while keeping >= 2 row blocks (v7x megacore sharding).
    for c in (1024, 512, 256, 128):
        if n_pad % c == 0 and n_pad // c >= 2:
            return c
    return n_pad


def _pick_red_tile(n_pad):
    # Largest reduction tile (multiple of 128) dividing n_pad.
    for c in (2048, 1024, 512, 256, 128):
        if n_pad % c == 0:
            return c
    return n_pad


def _pad2d(a, rows, cols, dtype):
    out = jnp.zeros((rows, cols), dtype)
    return out.at[: a.shape[0], : a.shape[1]].set(a.astype(dtype))


# --------------------------- kernels ---------------------------

def _gcn_layer_kernel(a_ref, x_ref, w_ref, b_ref, o_ref, acc_ref, *, tk, apply_relu):
    # Fused GCN layer step:
    #   acc[i] += A_hat[i, k] @ (X[k] @ W)       (X, W VMEM-resident; H tile recomputed on MXU)
    #   finalize at last k:  out = acc + bias (, ReLU)  -- single unmasked 128-lane store.
    k = pl.program_id(1)

    @pl.when(k == 0)
    def _():
        acc_ref[...] = jnp.zeros_like(acc_ref)

    off = pl.multiple_of(k * tk, tk)
    h_k = jnp.dot(x_ref[pl.ds(off, tk), :], w_ref[...],
                  preferred_element_type=jnp.float32).astype(jnp.bfloat16)
    acc_ref[...] += jnp.dot(a_ref[...], h_k, preferred_element_type=jnp.float32)

    @pl.when(k == pl.num_programs(1) - 1)
    def _():
        r = acc_ref[...] + b_ref[...]
        if apply_relu:
            r = jnp.maximum(r, 0.0)
        o_ref[...] = r.astype(o_ref.dtype)


def _pool_head_kernel(p_ref, h_ref, wh_ref, bh_ref, o_ref):
    # out = (P @ H2) @ Wh + bh  -- everything VMEM-resident, single invocation.
    g = jnp.dot(p_ref[...], h_ref[...], preferred_element_type=jnp.float32)
    o_ref[...] = jnp.dot(g.astype(jnp.bfloat16), wh_ref[...],
                         preferred_element_type=jnp.float32) + bh_ref[...]


# --------------------------- pallas_call wrappers ---------------------------

def _a_hat_spec(tm, tk, k_steps):
    idx = lambda i, k: (i, k)
    if k_steps >= 3:
        try:
            # Deeper buffering of the only per-step DMA stream once tiles are large.
            return pl.BlockSpec((tm, tk), idx, pipeline_mode=pl.Buffered(3))
        except TypeError:   # pipeline_mode kwarg unavailable -> default double buffering
            pass
    return pl.BlockSpec((tm, tk), idx)


def _gcn_layer(a_bf16, x_bf16, w_bf16, bias_f32, *, apply_relu):
    n_pad = a_bf16.shape[0]
    tm = _pick_row_tile(n_pad)
    tk = _pick_red_tile(n_pad)
    k_steps = n_pad // tk
    cost = pl.CostEstimate(
        flops=2 * n_pad * n_pad * LANE                       # A_hat @ H
              + 2 * (n_pad // tm) * n_pad * LANE * LANE,     # recomputed projection
        transcendentals=0,
        bytes_accessed=(a_bf16.size * 2 + x_bf16.size * 2 + w_bf16.size * 2
                        + bias_f32.size * 4 + n_pad * LANE * 2))
    return pl.pallas_call(
        functools.partial(_gcn_layer_kernel, tk=tk, apply_relu=apply_relu),
        out_shape=jax.ShapeDtypeStruct((n_pad, LANE), jnp.bfloat16),
        grid=(n_pad // tm, k_steps),
        in_specs=[
            _a_hat_spec(tm, tk, k_steps),                       # A_hat: streamed (TM, TK) tiles
            pl.BlockSpec((n_pad, LANE), lambda i, k: (0, 0)),   # X: fetched once, VMEM-resident
            pl.BlockSpec((LANE, LANE), lambda i, k: (0, 0)),    # W: resident
            pl.BlockSpec((1, LANE), lambda i, k: (0, 0)),       # bias: resident
        ],
        out_specs=pl.BlockSpec((tm, LANE), lambda i, k: (i, 0)),
        scratch_shapes=[pltpu.VMEM((tm, LANE), jnp.float32)],
        compiler_params=pltpu.CompilerParams(
            dimension_semantics=("parallel", "arbitrary"),
            vmem_limit_bytes=_VMEM_LIMIT),
        cost_estimate=cost,
    )(a_bf16, x_bf16, w_bf16, bias_f32)


def _pool_head(p_bf16, h_bf16, wh_bf16, bh_f32):
    return pl.pallas_call(
        _pool_head_kernel,
        out_shape=jax.ShapeDtypeStruct((G_PAD, LANE), jnp.float32),
        compiler_params=pltpu.CompilerParams(vmem_limit_bytes=_VMEM_LIMIT),
    )(p_bf16, h_bf16, wh_bf16, bh_f32)


# --------------------------- full forward ---------------------------

@jax.jit
def graph_gnn_forward(xp, ap, pp, w1p, b1p, w2p, b2p, whp, bhp):
    """GraphGNNModel forward (eval mode) on pre-padded bf16 operands.

    Layer 1: ReLU(A_hat @ (X W1) + b1)   (Dropout == identity)
    Layer 2: A_hat @ (H W2) + b2
    Head:    (mean_pool @ H2) @ Wh + bh  (Dropout == identity)
    """
    h = _gcn_layer(ap, xp, w1p, b1p, apply_relu=True)
    h = _gcn_layer(ap, h, w2p, b2p, apply_relu=False)
    return _pool_head(pp, h, whp, bhp)


# --------------------------- plain-JAX graph glue ---------------------------

def build_normalized_adjacency(edge_index, num_nodes, n_pad, dtype=jnp.bfloat16):
    """Padded dense GCN propagation matrix D^-1/2 (A+I) D^-1/2 (PyG gcn_norm semantics).

    Built directly at the padded size / target dtype so the jitted forward does no repacking.
    Rows and columns >= num_nodes are all-zero (see zero-padding invariant above)."""
    src, dst = edge_index[0], edge_index[1]
    a = jnp.zeros((n_pad, n_pad), jnp.float32).at[dst, src].add(1.0)
    ids = jnp.arange(num_nodes)
    a = a.at[ids, ids].add(1.0)                       # self loops on real nodes only
    deg = a.sum(axis=1)
    dinv = jnp.where(deg > 0, 1.0 / jnp.sqrt(deg), 0.0)
    return (dinv[:, None] * a * dinv[None, :]).astype(dtype)


def build_mean_pool_matrix(batch_idx, num_nodes, n_pad, dtype=jnp.bfloat16):
    """Padded (G_PAD, n_pad) mean-pool matrix; rows >= num_graphs and cols >= num_nodes are 0."""
    onehot = (batch_idx[None, :] == jnp.arange(G_PAD)[:, None]).astype(jnp.float32)
    counts = jnp.maximum(onehot.sum(axis=1, keepdims=True), 1.0)
    p = onehot / counts
    out = jnp.zeros((G_PAD, n_pad), jnp.float32).at[:, :num_nodes].set(p)
    return out.astype(dtype)


if __name__ == "__main__":
    # Small, module-consistent shapes.
    N = 16            # total nodes (2 graphs x 8 nodes)
    c_in = 4
    c_hidden = 32
    c_out = 3
    num_graphs = 2

    # Deterministic graph: a bidirectional ring inside each of the two graphs.
    edges = []
    for g in range(num_graphs):
        base = g * 8
        for i in range(8):
            edges.append((base + i, base + (i + 1) % 8))
            edges.append((base + (i + 1) % 8, base + i))
    edge_index = jnp.asarray(edges, dtype=jnp.int32).T          # [2, E]
    batch_idx = jnp.asarray([0] * 8 + [1] * 8, dtype=jnp.int32)  # [N]

    key = jax.random.PRNGKey(0)
    kx, k1, kb1, k2, kb2, kh, kbh = jax.random.split(key, 7)

    x = jax.random.normal(kx, (N, c_in), dtype=jnp.float32)

    # GCNConv weights: PyG stores lin.weight as [out, in]; kernel consumes W^T ([in, out]).
    w1 = jax.random.normal(k1, (c_in, c_hidden), dtype=jnp.float32) * 0.2
    b1 = jax.random.normal(kb1, (1, c_hidden), dtype=jnp.float32) * 0.05
    w2 = jax.random.normal(k2, (c_hidden, c_hidden), dtype=jnp.float32) * 0.2
    b2 = jax.random.normal(kb2, (1, c_hidden), dtype=jnp.float32) * 0.05
    wh = jax.random.normal(kh, (c_hidden, c_out), dtype=jnp.float32) * 0.2
    bh = jax.random.normal(kbh, (1, c_out), dtype=jnp.float32) * 0.05

    # Pad once, OUTSIDE the jitted forward (node dim -> multiple of 128, feature dims -> 128).
    n_pad = _round_up(N, LANE)
    xp = _pad2d(x, n_pad, LANE, jnp.bfloat16)
    ap = build_normalized_adjacency(edge_index, N, n_pad, jnp.bfloat16)
    pp = build_mean_pool_matrix(batch_idx, N, n_pad, jnp.bfloat16)
    w1p = _pad2d(w1, LANE, LANE, jnp.bfloat16)
    w2p = _pad2d(w2, LANE, LANE, jnp.bfloat16)
    whp = _pad2d(wh, LANE, LANE, jnp.bfloat16)
    b1p = _pad2d(b1, 1, LANE, jnp.float32)
    b2p = _pad2d(b2, 1, LANE, jnp.float32)
    bhp = _pad2d(bh, 1, LANE, jnp.float32)

    out_pad = graph_gnn_forward(xp, ap, pp, w1p, b1p, w2p, b2p, whp, bhp)
    out_pad = jax.block_until_ready(out_pad)
    out = out_pad[:num_graphs, :c_out]

    # Pure-JAX f32 reference (tolerance loosened for bf16 MXU inputs / f32 accumulation).
    a_ref = build_normalized_adjacency(edge_index, N, n_pad, jnp.float32)[:N, :N]
    p_ref = build_mean_pool_matrix(batch_idx, N, n_pad, jnp.float32)[:num_graphs, :N]
    h_ref = jnp.maximum(a_ref @ (x @ w1) + b1, 0.0)
    h_ref = a_ref @ (h_ref @ w2) + b2
    ref = (p_ref @ h_ref) @ wh + bh
    assert out.shape == (num_graphs, c_out)
    assert jnp.allclose(out, ref, atol=5e-2, rtol=5e-2), (
        f"max abs diff {jnp.max(jnp.abs(out - ref))}")

    print("KERNEL_OK")
</pallas_src>

<mosaic_0001>
module attributes {stable_mosaic.version = 11 : i64} {
  func.func @_pool_head_kernel(%arg0: memref<8x128xbf16, #tpu.memory_space<vmem>>, %arg1: memref<128x128xbf16, #tpu.memory_space<vmem>>, %arg2: memref<128x128xbf16, #tpu.memory_space<vmem>>, %arg3: memref<1x128xf32, #tpu.memory_space<vmem>>, %arg4: memref<8x128xf32, #tpu.memory_space<vmem>>) attributes {dimension_semantics = [], scalar_prefetch = 0 : i64, scratch_operands = 0 : i64, tpu.core_type = #tpu.core_type<tc>} {
    %c0 = arith.constant 0 : index
    %c0_0 = arith.constant 0 : index
    %0 = vector.load %arg0[%c0, %c0_0] : memref<8x128xbf16, #tpu.memory_space<vmem>>, vector<8x128xbf16>
    %c0_1 = arith.constant 0 : index
    %c0_2 = arith.constant 0 : index
    %1 = vector.load %arg1[%c0_1, %c0_2] : memref<128x128xbf16, #tpu.memory_space<vmem>>, vector<128x128xbf16>
    %cst = arith.constant dense<0.000000e+00> : vector<8x128xf32>
    %2 = tpu.matmul %0, %1, %cst {dimension_numbers = #tpu.dot_dimension_numbers<[1], [0], [0], [1], [0, 0, 1, 1], [], []>} : vector<8x128xbf16>, vector<128x128xbf16>, vector<8x128xf32> -> vector<8x128xf32>
    %3 = arith.truncf %2 : vector<8x128xf32> to vector<8x128xbf16>
    %c0_3 = arith.constant 0 : index
    %c0_4 = arith.constant 0 : index
    %4 = vector.load %arg2[%c0_3, %c0_4] : memref<128x128xbf16, #tpu.memory_space<vmem>>, vector<128x128xbf16>
    %cst_5 = arith.constant dense<0.000000e+00> : vector<8x128xf32>
    %5 = tpu.matmul %3, %4, %cst_5 {dimension_numbers = #tpu.dot_dimension_numbers<[1], [0], [0], [1], [0, 0, 1, 1], [], []>} : vector<8x128xbf16>, vector<128x128xbf16>, vector<8x128xf32> -> vector<8x128xf32>
    %c0_6 = arith.constant 0 : index
    %c0_7 = arith.constant 0 : index
    %6 = vector.load %arg3[%c0_6, %c0_7] : memref<1x128xf32, #tpu.memory_space<vmem>>, vector<1x128xf32>
    %7 = vector.broadcast %6 : vector<1x128xf32> to vector<8x128xf32>
    %8 = arith.addf %5, %7 : vector<8x128xf32>
    %c0_8 = arith.constant 0 : index
    %c0_9 = arith.constant 0 : index
    %9 = vector.load %arg4[%c0_8, %c0_9] : memref<8x128xf32, #tpu.memory_space<vmem>>, vector<8x128xf32>
    tpu.vector_store %arg4[%c0_8, %c0_9], %8 {strides = array<i32>} : memref<8x128xf32, #tpu.memory_space<vmem>>, vector<8x128xf32>,
    return
  }
}

module attributes {stable_mosaic.version = 11 : i64} {
  func.func @_gcn_layer_kernel(%arg0: i32, %arg1: i32, %arg2: memref<128x128xbf16, #tpu.memory_space<vmem>>, %arg3: memref<128x128xbf16, #tpu.memory_space<vmem>>, %arg4: memref<128x128xbf16, #tpu.memory_space<vmem>>, %arg5: memref<1x128xf32, #tpu.memory_space<vmem>>, %arg6: memref<128x128xbf16, #tpu.memory_space<vmem>>, %arg7: memref<128x128xf32, #tpu.memory_space<vmem>>) attributes {dimension_semantics = [#tpu.dimension_semantics<parallel>, #tpu.dimension_semantics<arbitrary>], iteration_bounds = array<i64: 1, 1>, scalar_prefetch = 0 : i64, scratch_operands = 1 : i64, tpu.core_type = #tpu.core_type<tc>, window_params = [{transform_indices = @transform_0, window_bounds = array<i64: 128, 128>}, {pipeline_mode = #tpu.pipeline_mode<synchronous>, transform_indices = @transform_1, window_bounds = array<i64: 128, 128>}, {pipeline_mode = #tpu.pipeline_mode<synchronous>, transform_indices = @transform_2, window_bounds = array<i64: 128, 128>}, {pipeline_mode = #tpu.pipeline_mode<synchronous>, transform_indices = @transform_3, window_bounds = array<i64: 1, 128>}, {transform_indices = @transform_4, window_bounds = array<i64: 128, 128>}]} {
    %c0_i32 = arith.constant 0 : i32
    %0 = arith.cmpi eq, %arg1, %c0_i32 : i32
    %1 = arith.extui %0 : i1 to i32
    %c0_i32_0 = arith.constant 0 : i32
    %2 = arith.cmpi ne, %1, %c0_i32_0 : i32
    scf.if %2 {
      %cst_12 = arith.constant 0.000000e+00 : f32
      %18 = vector.broadcast %cst_12 : f32 to vector<128x128xf32>
      %c0_13 = arith.constant 0 : index
      %c0_14 = arith.constant 0 : index
      %19 = vector.load %arg7[%c0_13, %c0_14] : memref<128x128xf32, #tpu.memory_space<vmem>>, vector<128x128xf32>
      tpu.vector_store %arg7[%c0_13, %c0_14], %18 {strides = array<i32>} : memref<128x128xf32, #tpu.memory_space<vmem>>, vector<128x128xf32>,
    } else {
    }
    %c128_i32 = arith.constant 128 : i32
    %3 = arith.muli %arg1, %c128_i32 : i32
    %4 = tpu.assume_multiple %3, 128 : i32
    %5 = arith.index_cast %4 : i32 to index
    %c0 = arith.constant 0 : index
    %6 = vector.load %arg3[%5, %c0] : memref<128x128xbf16, #tpu.memory_space<vmem>>, vector<128x128xbf16>
    %c0_1 = arith.constant 0 : index
    %c0_2 = arith.constant 0 : index
    %7 = vector.load %arg4[%c0_1, %c0_2] : memref<128x128xbf16, #tpu.memory_space<vmem>>, vector<128x128xbf16>
    %cst = arith.constant dense<0.000000e+00> : vector<128x128xf32>
    %8 = tpu.matmul %6, %7, %cst {dimension_numbers = #tpu.dot_dimension_numbers<[1], [0], [0], [1], [0, 0, 1, 1], [], []>} : vector<128x128xbf16>, vector<128x128xbf16>, vector<128x128xf32> -> vector<128x128xf32>
    %9 = arith.truncf %8 : vector<128x128xf32> to vector<128x128xbf16>
    %c0_3 = arith.constant 0 : index
    %c0_4 = arith.constant 0 : index
    %10 = vector.load %arg7[%c0_3, %c0_4] : memref<128x128xf32, #tpu.memory_space<vmem>>, vector<128x128xf32>
    %c0_5 = arith.constant 0 : index
    %c0_6 = arith.constant 0 : index
    %11 = vector.load %arg2[%c0_5, %c0_6] : memref<128x128xbf16, #tpu.memory_space<vmem>>, vector<128x128xbf16>
    %cst_7 = arith.constant dense<0.000000e+00> : vector<128x128xf32>
    %12 = tpu.matmul %11, %9, %cst_7 {dimension_numbers = #tpu.dot_dimension_numbers<[1], [0], [0], [1], [0, 0, 1, 1], [], []>} : vector<128x128xbf16>, vector<128x128xbf16>, vector<128x128xf32> -> vector<128x128xf32>
    %13 = arith.addf %10, %12 : vector<128x128xf32>
    %c0_8 = arith.constant 0 : index
    %c0_9 = arith.constant 0 : index
    %14 = vector.load %arg7[%c0_8, %c0_9] : memref<128x128xf32, #tpu.memory_space<vmem>>, vector<128x128xf32>
    tpu.vector_store %arg7[%c0_8, %c0_9], %13 {strides = array<i32>} : memref<128x128xf32, #tpu.memory_space<vmem>>, vector<128x128xf32>,
    %c0_i32_10 = arith.constant 0 : i32
    %15 = arith.cmpi eq, %arg1, %c0_i32_10 : i32
    %16 = arith.extui %15 : i1 to i32
    %c0_i32_11 = arith.constant 0 : i32
    %17 = arith.cmpi ne, %16, %c0_i32_11 : i32
    scf.if %17 {
      %c0_12 = arith.constant 0 : index
      %c0_13 = arith.constant 0 : index
      %18 = vector.load %arg7[%c0_12, %c0_13] : memref<128x128xf32, #tpu.memory_space<vmem>>, vector<128x128xf32>
      %c0_14 = arith.constant 0 : index
      %c0_15 = arith.constant 0 : index
      %19 = vector.load %arg5[%c0_14, %c0_15] : memref<1x128xf32, #tpu.memory_space<vmem>>, vector<1x128xf32>
      %20 = vector.broadcast %19 : vector<1x128xf32> to vector<128x128xf32>
      %21 = arith.addf %18, %20 : vector<128x128xf32>
      %cst_16 = arith.constant 0.000000e+00 : f32
      %22 = vector.broadcast %cst_16 : f32 to vector<128x128xf32>
      %23 = arith.maximumf %21, %22 : vector<128x128xf32>
      %24 = arith.truncf %23 : vector<128x128xf32> to vector<128x128xbf16>
      %c0_17 = arith.constant 0 : index
      %c0_18 = arith.constant 0 : index
      %25 = vector.load %arg6[%c0_17, %c0_18] : memref<128x128xbf16, #tpu.memory_space<vmem>>, vector<128x128xbf16>
      tpu.vector_store %arg6[%c0_17, %c0_18], %24 {strides = array<i32>} : memref<128x128xbf16, #tpu.memory_space<vmem>>, vector<128x128xbf16>,
    } else {
    }
    return
  }
  func.func @transform_0(%arg0: i32, %arg1: i32) -> (i32, i32) {
    %c0_i32 = arith.constant 0 : i32
    return %arg0, %arg1 : i32, i32
  }
  func.func @transform_1(%arg0: i32, %arg1: i32) -> (i32, i32) {
    %c0_i32 = arith.constant 0 : i32
    %c0_i32_0 = arith.constant 0 : i32
    %c0_i32_1 = arith.constant 0 : i32
    return %c0_i32, %c0_i32_0 : i32, i32
  }
  func.func @transform_2(%arg0: i32, %arg1: i32) -> (i32, i32) {
    %c0_i32 = arith.constant 0 : i32
    %c0_i32_0 = arith.constant 0 : i32
    %c0_i32_1 = arith.constant 0 : i32
    return %c0_i32, %c0_i32_0 : i32, i32
  }
  func.func @transform_3(%arg0: i32, %arg1: i32) -> (i32, i32) {
    %c0_i32 = arith.constant 0 : i32
    %c0_i32_0 = arith.constant 0 : i32
    %c0_i32_1 = arith.constant 0 : i32
    return %c0_i32, %c0_i32_0 : i32, i32
  }
  func.func @transform_4(%arg0: i32, %arg1: i32) -> (i32, i32) {
    %c0_i32 = arith.constant 0 : i32
    %c0_i32_0 = arith.constant 0 : i32
    return %arg0, %c0_i32 : i32, i32
  }
}

module attributes {stable_mosaic.version = 11 : i64} {
  func.func @_gcn_layer_kernel(%arg0: i32, %arg1: i32, %arg2: memref<128x128xbf16, #tpu.memory_space<vmem>>, %arg3: memref<128x128xbf16, #tpu.memory_space<vmem>>, %arg4: memref<128x128xbf16, #tpu.memory_space<vmem>>, %arg5: memref<1x128xf32, #tpu.memory_space<vmem>>, %arg6: memref<128x128xbf16, #tpu.memory_space<vmem>>, %arg7: memref<128x128xf32, #tpu.memory_space<vmem>>) attributes {dimension_semantics = [#tpu.dimension_semantics<parallel>, #tpu.dimension_semantics<arbitrary>], iteration_bounds = array<i64: 1, 1>, scalar_prefetch = 0 : i64, scratch_operands = 1 : i64, tpu.core_type = #tpu.core_type<tc>, window_params = [{transform_indices = @transform_0, window_bounds = array<i64: 128, 128>}, {pipeline_mode = #tpu.pipeline_mode<synchronous>, transform_indices = @transform_1, window_bounds = array<i64: 128, 128>}, {pipeline_mode = #tpu.pipeline_mode<synchronous>, transform_indices = @transform_2, window_bounds = array<i64: 128, 128>}, {pipeline_mode = #tpu.pipeline_mode<synchronous>, transform_indices = @transform_3, window_bounds = array<i64: 1, 128>}, {transform_indices = @transform_4, window_bounds = array<i64: 128, 128>}]} {
    %c0_i32 = arith.constant 0 : i32
    %0 = arith.cmpi eq, %arg1, %c0_i32 : i32
    %1 = arith.extui %0 : i1 to i32
    %c0_i32_0 = arith.constant 0 : i32
    %2 = arith.cmpi ne, %1, %c0_i32_0 : i32
    scf.if %2 {
      %cst_12 = arith.constant 0.000000e+00 : f32
      %18 = vector.broadcast %cst_12 : f32 to vector<128x128xf32>
      %c0_13 = arith.constant 0 : index
      %c0_14 = arith.constant 0 : index
      %19 = vector.load %arg7[%c0_13, %c0_14] : memref<128x128xf32, #tpu.memory_space<vmem>>, vector<128x128xf32>
      tpu.vector_store %arg7[%c0_13, %c0_14], %18 {strides = array<i32>} : memref<128x128xf32, #tpu.memory_space<vmem>>, vector<128x128xf32>,
    } else {
    }
    %c128_i32 = arith.constant 128 : i32
    %3 = arith.muli %arg1, %c128_i32 : i32
    %4 = tpu.assume_multiple %3, 128 : i32
    %5 = arith.index_cast %4 : i32 to index
    %c0 = arith.constant 0 : index
    %6 = vector.load %arg3[%5, %c0] : memref<128x128xbf16, #tpu.memory_space<vmem>>, vector<128x128xbf16>
    %c0_1 = arith.constant 0 : index
    %c0_2 = arith.constant 0 : index
    %7 = vector.load %arg4[%c0_1, %c0_2] : memref<128x128xbf16, #tpu.memory_space<vmem>>, vector<128x128xbf16>
    %cst = arith.constant dense<0.000000e+00> : vector<128x128xf32>
    %8 = tpu.matmul %6, %7, %cst {dimension_numbers = #tpu.dot_dimension_numbers<[1], [0], [0], [1], [0, 0, 1, 1], [], []>} : vector<128x128xbf16>, vector<128x128xbf16>, vector<128x128xf32> -> vector<128x128xf32>
    %9 = arith.truncf %8 : vector<128x128xf32> to vector<128x128xbf16>
    %c0_3 = arith.constant 0 : index
    %c0_4 = arith.constant 0 : index
    %10 = vector.load %arg7[%c0_3, %c0_4] : memref<128x128xf32, #tpu.memory_space<vmem>>, vector<128x128xf32>
    %c0_5 = arith.constant 0 : index
    %c0_6 = arith.constant 0 : index
    %11 = vector.load %arg2[%c0_5, %c0_6] : memref<128x128xbf16, #tpu.memory_space<vmem>>, vector<128x128xbf16>
    %cst_7 = arith.constant dense<0.000000e+00> : vector<128x128xf32>
    %12 = tpu.matmul %11, %9, %cst_7 {dimension_numbers = #tpu.dot_dimension_numbers<[1], [0], [0], [1], [0, 0, 1, 1], [], []>} : vector<128x128xbf16>, vector<128x128xbf16>, vector<128x128xf32> -> vector<128x128xf32>
    %13 = arith.addf %10, %12 : vector<128x128xf32>
    %c0_8 = arith.constant 0 : index
    %c0_9 = arith.constant 0 : index
    %14 = vector.load %arg7[%c0_8, %c0_9] : memref<128x128xf32, #tpu.memory_space<vmem>>, vector<128x128xf32>
    tpu.vector_store %arg7[%c0_8, %c0_9], %13 {strides = array<i32>} : memref<128x128xf32, #tpu.memory_space<vmem>>, vector<128x128xf32>,
    %c0_i32_10 = arith.constant 0 : i32
    %15 = arith.cmpi eq, %arg1, %c0_i32_10 : i32
    %16 = arith.extui %15 : i1 to i32
    %c0_i32_11 = arith.constant 0 : i32
    %17 = arith.cmpi ne, %16, %c0_i32_11 : i32
    scf.if %17 {
      %c0_12 = arith.constant 0 : index
      %c0_13 = arith.constant 0 : index
      %18 = vector.load %arg7[%c0_12, %c0_13] : memref<128x128xf32, #tpu.memory_space<vmem>>, vector<128x128xf32>
      %c0_14 = arith.constant 0 : index
      %c0_15 = arith.constant 0 : index
      %19 = vector.load %arg5[%c0_14, %c0_15] : memref<1x128xf32, #tpu.memory_space<vmem>>, vector<1x128xf32>
      %20 = vector.broadcast %19 : vector<1x128xf32> to vector<128x128xf32>
      %21 = arith.addf %18, %20 : vector<128x128xf32>
      %22 = arith.truncf %21 : vector<128x128xf32> to vector<128x128xbf16>
      %c0_16 = arith.constant 0 : index
      %c0_17 = arith.constant 0 : index
      %23 = vector.load %arg6[%c0_16, %c0_17] : memref<128x128xbf16, #tpu.memory_space<vmem>>, vector<128x128xbf16>
      tpu.vector_store %arg6[%c0_16, %c0_17], %22 {strides = array<i32>} : memref<128x128xbf16, #tpu.memory_space<vmem>>, vector<128x128xbf16>,
    } else {
    }
    return
  }
  func.func @transform_0(%arg0: i32, %arg1: i32) -> (i32, i32) {
    %c0_i32 = arith.constant 0 : i32
    return %arg0, %arg1 : i32, i32
  }
  func.func @transform_1(%arg0: i32, %arg1: i32) -> (i32, i32) {
    %c0_i32 = arith.constant 0 : i32
    %c0_i32_0 = arith.constant 0 : i32
    %c0_i32_1 = arith.constant 0 : i32
    return %c0_i32, %c0_i32_0 : i32, i32
  }
  func.func @transform_2(%arg0: i32, %arg1: i32) -> (i32, i32) {
    %c0_i32 = arith.constant 0 : i32
    %c0_i32_0 = arith.constant 0 : i32
    %c0_i32_1 = arith.constant 0 : i32
    return %c0_i32, %c0_i32_0 : i32, i32
  }
  func.func @transform_3(%arg0: i32, %arg1: i32) -> (i32, i32) {
    %c0_i32 = arith.constant 0 : i32
    %c0_i32_0 = arith.constant 0 : i32
    %c0_i32_1 = arith.constant 0 : i32
    return %c0_i32, %c0_i32_0 : i32, i32
  }
  func.func @transform_4(%arg0: i32, %arg1: i32) -> (i32, i32) {
    %c0_i32 = arith.constant 0 : i32
    %c0_i32_0 = arith.constant 0 : i32
    return %arg0, %c0_i32 : i32, i32
  }
}

</mosaic_0001>

<bundles_post_ra>
// kernel: graph_gnn_forward.5
= control target key start
LH: loop header
LB: loop body
LE: loop exit
PB: predicated region body
PF: predicated region fallthrough
CT: control target
= control target key end

     0   :  { %s386_s0 = inlined_call_operand.vmem [shape: bf16[8,128], index: 0, kind: input, shape index: {}]   ;;  %s387_s1 = inlined_call_operand.vmem [shape: bf16[128,128], index: 1, kind: input, shape index: {}]   ;;  %s388_s2 = inlined_call_operand.vmem [shape: bf16[128,128], index: 2, kind: input, shape index: {}]   ;;  %s389_s3 = inlined_call_operand.vmem [shape: f32[1,128], index: 3, kind: input, shape index: {}]   ;;  %s390_s4 = inlined_call_operand.hbm [shape: f32[8,128], index: 4, kind: output, shape index: {}]  }
   0x1   :  { %v266_v0 = vld [vmem:[%s387_s1 + $0x38] sm:$0xff]  ;;  %v265_v1 = vld [vmem:[%s387_s1 + $0x30] sm:$0xff] }
   0x2   :  { %83 = vmatpush.bf16.msra.mxu0 %v266_v0  ;;  %v274_v2 = vld [vmem:[%s388_s2 + $0x38] sm:$0xff]  ;;  %v273_v3 = vld [vmem:[%s388_s2 + $0x30] sm:$0xff] }
   0x3   :  { %165 = vmatpush.bf16.msra.mxu1 %v274_v2 }
   0x4   :  { %9 = vsyncpa [#allocation3], 0  ;;  %v264_v4 = vld [vmem:[%s387_s1 + $0x28] sm:$0xff]  ;;  %v263_v6 = vld [vmem:[%s387_s1 + $0x20] sm:$0xff] }
   0x5   :  { %v272_v5 = vld [vmem:[%s388_s2 + $0x28] sm:$0xff]  ;;  %v271_v7 = vld [vmem:[%s388_s2 + $0x20] sm:$0xff]  ;;  %v262_v8 = vld [vmem:[%s387_s1 + $0x18] sm:$0xff] }
   0x6   :  { %84 = vmatpush.bf16.msra.mxu0 %v265_v1  ;;  %v270_v9 = vld [vmem:[%s388_s2 + $0x18] sm:$0xff]  ;;  %v261_v10 = vld [vmem:[%s387_s1 + $0x10] sm:$0xff]  ;;  %v260_v12 = vld [vmem:[%s387_s1 + $0x8] sm:$0xff] }
   0x7   :  { %166 = vmatpush.bf16.msra.mxu1 %v273_v3  ;;  %v269_v11 = vld [vmem:[%s388_s2 + $0x10] sm:$0xff]  ;;  %v268_v13 = vld [vmem:[%s388_s2 + $0x8] sm:$0xff]  ;;  %v259_v14 = vld [vmem:[%s387_s1] sm:$0xff]  ;;  %s303_s1 = smov [#allocation2]  }
   0x8   :  { %v18_v15 = vld [vmem:[%s386_s0] sm:$0xf]  ;;  %s184_s25 = sshll.u32 %s303_s1, 4  ;;  %s186_s0 = sshll.u32 %s390_s4, 4  ;;  %s185_s25 = int_to_ptr.vmem [resolvable:$true] %s184_s25  ;;  %s187_s0 = int_to_ptr.hbm [resolvable:$true] %s186_s0 }
   0x9   :  { %v267_v16 = vld [vmem:[%s388_s2] sm:$0xff] }
   0xa   :  { %85 = vmatpush.bf16.msra.mxu0 %v264_v4  ;;  %v276_v20 = vld [vmem:[%s389_s3] ss:$0 sm:$0xff] }
   0xb   :  { %167 = vmatpush.bf16.msra.mxu1 %v272_v5 }
   0xe   :  { %86 = vmatpush.bf16.msra.mxu0 %v263_v6 }
   0xf   :  { %168 = vmatpush.bf16.msra.mxu1 %v271_v7 }
  0x12   :  { %87 = vmatpush.bf16.msra.mxu0 %v262_v8 }
  0x13   :  { %169 = vmatpush.bf16.msra.mxu1 %v270_v9 }
  0x16   :  { %88 = vmatpush.bf16.msra.mxu0 %v261_v10 }
  0x17   :  { %170 = vmatpush.bf16.msra.mxu1 %v269_v11 }
  0x1a   :  { %89 = vmatpush.bf16.msra.mxu0 %v260_v12 }
  0x1b   :  { %171 = vmatpush.bf16.msra.mxu1 %v268_v13 }
  0x1e   :  { %90 = vmatpush.bf16.msra.mxu0 %v259_v14 }
  0x1f   :  { %172 = vmatpush.bf16.msra.mxu1 %v267_v16 }
  0x21   :  { %91 = vmatmul.bf16.vlgmr.msra.gmra.mxu0 %v18_v15 }
  0x9e   :  { %v92_v17 = vpop.f32.mrf.mxu0 }
  0x9f   :  { %v96_v18 = vpack.c.bf16 %v92_v17, %v92_v17 }
  0xa1   :  { %173 = vmatmul.bf16.vlgmr.msra.gmra.mxu1 %v96_v18 }
  0xa6   :  { %v94_v19 = vpop.f32.mrf.mxu0 }
 0x11e   :  { %v174_v21 = vpop.f32.mrf.mxu1 }
 0x11f   :  { %v175_v22 = vadd.f32 %v276_v20, %v174_v21 }
 0x121   :  { %178 = vst [vmem:[#allocation2] sm:$0xff] %v175_v22 }
 0x122   :  { %189 = dma.vmem_to_hbm [thread:$0]  %s185_s25, 128, %s187_s0, [#allocation3]  }
 0x126   :  { %v176_v23 = vpop.f32.mrf.mxu1 }
 0x127   :  { %301 = dma.done.wait [#allocation3], 128  }
 0x128   :  { %302 = vsyncadd [#allocation3], 4294967168 }
 0x129   :  { %194 = vsyncpa [#allocation3], 1 }

// kernel: graph_gnn_forward.4
= control target key start
LH: loop header
LB: loop body
LE: loop exit
PB: predicated region body
PF: predicated region fallthrough
CT: control target
= control target key end

     0   :  { %s773_s2 = inlined_call_operand.vmem [shape: bf16[128,128], index: 2, kind: input, shape index: {}]   ;;  %s774_s1 = inlined_call_operand.vmem [shape: bf16[128,128], index: 1, kind: input, shape index: {}]   ;;  %s775_s3 = inlined_call_operand.vmem [shape: f32[1,128], index: 3, kind: input, shape index: {}]   ;;  %s776_s0 = inlined_call_operand.vmem [shape: bf16[128,128], index: 0, kind: input, shape index: {}]   ;;  %s777_s4 = inlined_call_operand.vmem [shape: bf16[128,128], index: 4, kind: output, shape index: {}]  }
   0x1   :  { %v576_v0 = vld [vmem:[%s773_s2 + $0x38] sm:$0xff]  ;;  %v575_v1 = vld [vmem:[%s773_s2 + $0x30] sm:$0xff]  ;;  %v574_v2 = vld [vmem:[%s773_s2 + $0x28] sm:$0xff] }
   0x2   :  { %632 = vmatpush.bf16.msra.mxu2 %v576_v0  ;;  %170 = vmatpush.bf16.msra.mxu0 %v576_v0  ;;  %v573_v3 = vld [vmem:[%s773_s2 + $0x20] sm:$0xff]  ;;  %v572_v4 = vld [vmem:[%s773_s2 + $0x18] sm:$0xff]  ;;  %v571_v5 = vld [vmem:[%s773_s2 + $0x10] sm:$0xff] }
   0x3   :  { %v570_v6 = vld [vmem:[%s773_s2 + $0x8] sm:$0xff]  ;;  %v569_v7 = vld [vmem:[%s773_s2] sm:$0xff]  ;;  %v567_v12 = vld [vmem:[%s774_s1 + $0x30] sm:$0xff] }
   0x4   :  { %v565_v8 = vld [vmem:[%s774_s1 + $0x20] sm:$0xff]  ;;  %v566_v10 = vld [vmem:[%s774_s1 + $0x28] sm:$0xff]  ;;  %v563_v13 = vld [vmem:[%s774_s1 + $0x10] sm:$0xff] }
   0x5   :  { %v561_v9 = vld [vmem:[%s774_s1] sm:$0xff]  ;;  %v562_v11 = vld [vmem:[%s774_s1 + $0x8] sm:$0xff]  ;;  %v568_v14 = vld [vmem:[%s774_s1 + $0x38] sm:$0xff] }
   0x6   :  { %633 = vmatpush.bf16.msra.mxu2 %v575_v1  ;;  %171 = vmatpush.bf16.msra.mxu0 %v575_v1  ;;  %v564_v15 = vld [vmem:[%s774_s1 + $0x18] sm:$0xff]  ;;  %v577_v40 = vld [vmem:[%s776_s0] sm:$0xff]  ;;  %v578_v42 = vld [vmem:[%s776_s0 + $0x8] sm:$0xff] }
   0x7   :  { %v581_v41 = vld [vmem:[%s776_s0 + $0x20] sm:$0xff]  ;;  %v582_v43 = vld [vmem:[%s776_s0 + $0x28] sm:$0xff]  ;;  %v579_v44 = vld [vmem:[%s776_s0 + $0x10] sm:$0xff] }
   0x8   :  { %v583_v45 = vld [vmem:[%s776_s0 + $0x30] sm:$0xff]  ;;  %v580_v46 = vld [vmem:[%s776_s0 + $0x18] sm:$0xff]  ;;  %v648_v49 = vld [vmem:[%s775_s3] ss:$0 sm:$0xff] }
   0x9   :  { %v584_v47 = vld [vmem:[%s776_s0 + $0x38] sm:$0xff] }
   0xa   :  { %634 = vmatpush.bf16.msra.mxu2 %v574_v2  ;;  %172 = vmatpush.bf16.msra.mxu0 %v574_v2 }
   0xe   :  { %635 = vmatpush.bf16.msra.mxu2 %v573_v3  ;;  %173 = vmatpush.bf16.msra.mxu0 %v573_v3 }
  0x12   :  { %636 = vmatpush.bf16.msra.mxu2 %v572_v4  ;;  %174 = vmatpush.bf16.msra.mxu0 %v572_v4 }
  0x16   :  { %637 = vmatpush.bf16.msra.mxu2 %v571_v5  ;;  %175 = vmatpush.bf16.msra.mxu0 %v571_v5 }
  0x1a   :  { %638 = vmatpush.bf16.msra.mxu2 %v570_v6  ;;  %176 = vmatpush.bf16.msra.mxu0 %v570_v6 }
  0x1e   :  { %639 = vmatpush.bf16.msra.mxu2 %v569_v7  ;;  %177 = vmatpush.bf16.msra.mxu0 %v569_v7 }
  0x21   :  { %198 = vmatmul.bf16.vlgmr.msra.gmra.mxu2 %v565_v8  ;;  %178 = vmatmul.bf16.vlgmr.msra.gmra.mxu0 %v561_v9 }
  0x31   :  { %203 = vmatmul.bf16.gmra.mxu2 %v566_v10  ;;  %183 = vmatmul.bf16.gmra.mxu0 %v562_v11 }
  0x41   :  { %208 = vmatmul.bf16.gmra.mxu2 %v567_v12  ;;  %188 = vmatmul.bf16.gmra.mxu0 %v563_v13 }
  0x51   :  { %213 = vmatmul.bf16.gmra.mxu2 %v568_v14  ;;  %193 = vmatmul.bf16.gmra.mxu0 %v564_v15 }
  0x9e   :  { %v179_v17 = vpop.f32.mrf.mxu0 }
  0xa4   :  { %v199_v16 = vpop.f32.mrf.mxu2 }
  0xa6   :  { %v181_v19 = vpop.f32.mrf.mxu0 }
  0xa7   :  { %v219_v39 = vpack.c.bf16 %v181_v19, %v179_v17 }
  0xac   :  { %v201_v18 = vpop.f32.mrf.mxu2 }
  0xad   :  { %v223_v34 = vpack.c.bf16 %v201_v18, %v199_v16 }
  0xae   :  { %v184_v21 = vpop.f32.mrf.mxu0 }
  0xb4   :  { %v204_v20 = vpop.f32.mrf.mxu2 }
  0xb6   :  { %v186_v23 = vpop.f32.mrf.mxu0 }
  0xb7   :  { %v220_v38 = vpack.c.bf16 %v186_v23, %v184_v21 }
  0xbc   :  { %v206_v22 = vpop.f32.mrf.mxu2 }
  0xbd   :  { %v224_v33 = vpack.c.bf16 %v206_v22, %v204_v20 }
  0xbe   :  { %v189_v25 = vpop.f32.mrf.mxu0 }
  0xc4   :  { %v209_v24 = vpop.f32.mrf.mxu2 }
  0xc6   :  { %v191_v28 = vpop.f32.mrf.mxu0 }
  0xc7   :  { %v221_v37 = vpack.c.bf16 %v191_v28, %v189_v25 }
  0xcc   :  { %v211_v26 = vpop.f32.mrf.mxu2 }
  0xcd   :  { %v225_v32 = vpack.c.bf16 %v211_v26, %v209_v24 }
  0xce   :  { %v194_v31 = vpop.f32.mrf.mxu0 }
  0xd4   :  { %v214_v27 = vpop.f32.mrf.mxu2 }
  0xd6   :  { %v196_v35 = vpop.f32.mrf.mxu0 }
  0xd7   :  { %v222_v36 = vpack.c.bf16 %v196_v35, %v194_v31 }
  0xdc   :  { %v216_v29 = vpop.f32.mrf.mxu2 }
  0xdd   :  { %v226_v30 = vpack.c.bf16 %v216_v29, %v214_v27 }
  0xdf   :  { %307 = vmatpush.bf16.msra.mxu1 %v226_v30  ;;  %640 = vmatpush.bf16.msra.mxu3 %v226_v30 }
  0xe3   :  { %308 = vmatpush.bf16.msra.mxu1 %v225_v32  ;;  %641 = vmatpush.bf16.msra.mxu3 %v225_v32 }
  0xe7   :  { %309 = vmatpush.bf16.msra.mxu1 %v224_v33  ;;  %642 = vmatpush.bf16.msra.mxu3 %v224_v33 }
  0xeb   :  { %310 = vmatpush.bf16.msra.mxu1 %v223_v34  ;;  %643 = vmatpush.bf16.msra.mxu3 %v223_v34 }
  0xef   :  { %311 = vmatpush.bf16.msra.mxu1 %v222_v36  ;;  %644 = vmatpush.bf16.msra.mxu3 %v222_v36 }
  0xf3   :  { %312 = vmatpush.bf16.msra.mxu1 %v221_v37  ;;  %645 = vmatpush.bf16.msra.mxu3 %v221_v37 }
  0xf7   :  { %313 = vmatpush.bf16.msra.mxu1 %v220_v38  ;;  %646 = vmatpush.bf16.msra.mxu3 %v220_v38 }
  0xfb   :  { %314 = vmatpush.bf16.msra.mxu1 %v219_v39  ;;  %647 = vmatpush.bf16.msra.mxu3 %v219_v39 }
  0xfe   :  { %315 = vmatmul.bf16.vlgmr.msra.gmra.mxu1 %v577_v40  ;;  %335 = vmatmul.bf16.vlgmr.msra.gmra.mxu3 %v581_v41 }
 0x10e   :  { %320 = vmatmul.bf16.gmra.mxu1 %v578_v42  ;;  %340 = vmatmul.bf16.gmra.mxu3 %v582_v43 }
 0x11e   :  { %325 = vmatmul.bf16.gmra.mxu1 %v579_v44  ;;  %345 = vmatmul.bf16.gmra.mxu3 %v583_v45 }
 0x12e   :  { %330 = vmatmul.bf16.gmra.mxu1 %v580_v46  ;;  %350 = vmatmul.bf16.gmra.mxu3 %v584_v47 }
 0x17b   :  { %v316_v48 = vpop.f32.mrf.mxu1 }
 0x17c   :  { %v411_v52 = vadd.f32 %v648_v49, %v316_v48 }
 0x181   :  { %v336_v50 = vpop.f32.mrf.mxu3 }
 0x182   :  { %v419_v56 = vadd.f32 %v648_v49, %v336_v50 }
 0x183   :  { %v318_v51 = vpop.f32.mrf.mxu1 }
 0x184   :  { %v412_v53 = vadd.f32 %v648_v49, %v318_v51 }
 0x186   :  { %v588_v54 = vpack.c.bf16 %v412_v53, %v411_v52 }
 0x188   :  { %589 = vst [vmem:[%s777_s4] sm:$0xff] %v588_v54  }
 0x189   :  { %v338_v55 = vpop.f32.mrf.mxu3 }
 0x18a   :  { %v420_v57 = vadd.f32 %v648_v49, %v338_v55 }
 0x18b   :  { %v321_v58 = vpop.f32.mrf.mxu1 }
 0x18c   :  { %v608_v59 = vpack.c.bf16 %v420_v57, %v419_v56  ;;  %v413_v62 = vadd.f32 %v648_v49, %v321_v58 }
 0x18e   :  { %628 = vst [vmem:[%s777_s4 + $0x20] sm:$0xff] %v608_v59  }
 0x191   :  { %v341_v60 = vpop.f32.mrf.mxu3 }
 0x192   :  { %v421_v2 = vadd.f32 %v648_v49, %v341_v60 }
 0x193   :  { %v323_v61 = vpop.f32.mrf.mxu1 }
 0x194   :  { %v414_v63 = vadd.f32 %v648_v49, %v323_v61 }
 0x196   :  { %v593_v0 = vpack.c.bf16 %v414_v63, %v413_v62 }
 0x198   :  { %625 = vst [vmem:[%s777_s4 + $0x8] sm:$0xff] %v593_v0  }
 0x199   :  { %v343_v1 = vpop.f32.mrf.mxu3 }
 0x19a   :  { %v422_v3 = vadd.f32 %v648_v49, %v343_v1 }
 0x19b   :  { %v326_v4 = vpop.f32.mrf.mxu1 }
 0x19c   :  { %v613_v5 = vpack.c.bf16 %v422_v3, %v421_v2  ;;  %v415_v8 = vadd.f32 %v648_v49, %v326_v4 }
 0x19e   :  { %629 = vst [vmem:[%s777_s4 + $0x28] sm:$0xff] %v613_v5  }
 0x1a1   :  { %v346_v6 = vpop.f32.mrf.mxu3 }
 0x1a2   :  { %v423_v12 = vadd.f32 %v648_v49, %v346_v6 }
 0x1a3   :  { %v328_v7 = vpop.f32.mrf.mxu1 }
 0x1a4   :  { %v416_v9 = vadd.f32 %v648_v49, %v328_v7 }
 0x1a6   :  { %v598_v10 = vpack.c.bf16 %v416_v9, %v415_v8 }
 0x1a8   :  { %626 = vst [vmem:[%s777_s4 + $0x10] sm:$0xff] %v598_v10  }
 0x1a9   :  { %v348_v11 = vpop.f32.mrf.mxu3 }
 0x1aa   :  { %v424_v13 = vadd.f32 %v648_v49, %v348_v11 }
 0x1ab   :  { %v331_v14 = vpop.f32.mrf.mxu1 }
 0x1ac   :  { %v618_v15 = vpack.c.bf16 %v424_v13, %v423_v12  ;;  %v417_v18 = vadd.f32 %v648_v49, %v331_v14 }
 0x1ae   :  { %630 = vst [vmem:[%s777_s4 + $0x30] sm:$0xff] %v618_v15  }
 0x1b1   :  { %v351_v16 = vpop.f32.mrf.mxu3 }
 0x1b2   :  { %v425_v22 = vadd.f32 %v648_v49, %v351_v16 }
 0x1b3   :  { %v333_v17 = vpop.f32.mrf.mxu1 }
 0x1b4   :  { %v418_v19 = vadd.f32 %v648_v49, %v333_v17 }
 0x1b6   :  { %v603_v20 = vpack.c.bf16 %v418_v19, %v417_v18 }
 0x1b8   :  { %627 = vst [vmem:[%s777_s4 + $0x18] sm:$0xff] %v603_v20  }
 0x1b9   :  { %v353_v21 = vpop.f32.mrf.mxu3 }
 0x1ba   :  { %v426_v23 = vadd.f32 %v648_v49, %v353_v21 }
 0x1bc   :  { %v623_v24 = vpack.c.bf16 %v426_v23, %v425_v22 }
 0x1be   :  { %631 = vst [vmem:[%s777_s4 + $0x38] sm:$0xff] %v623_v24  }

// kernel: graph_gnn_forward.3
= control target key start
LH: loop header
LB: loop body
LE: loop exit
PB: predicated region body
PF: predicated region fallthrough
CT: control target
= control target key end

     0   :  { %9 = vsyncpa [#allocation4], 0  ;;  %s861_s0 = inlined_call_operand.hbm [shape: bf16[128,128], index: 0, kind: input, shape index: {}]   ;;  %s862_s1 = inlined_call_operand.hbm [shape: bf16[128,128], index: 1, kind: input, shape index: {}]   ;;  %s863_s2 = inlined_call_operand.hbm [shape: bf16[128,128], index: 2, kind: input, shape index: {}]   ;;  %s864_s3 = inlined_call_operand.vmem [shape: f32[1,128], index: 3, kind: input, shape index: {}]   ;;  %s865_s4 = inlined_call_operand.vmem [shape: bf16[128,128], index: 4, kind: output, shape index: {}]  }
   0x1   :  { %10 = vsyncpa [#allocation6], 0  ;;  %s28_s17 = sshll.u32 %s862_s1, 4  ;;  %s795_s18 = smov [#allocation5]   ;;  %s29_s17 = int_to_ptr.hbm [resolvable:$true] %s28_s17 }
   0x2   :  { %s30_s19 = sshll.u32 %s795_s18, 4  ;;  %s15_s22 = sshll.u32 %s861_s0, 4  ;;  %s31_s19 = int_to_ptr.vmem [resolvable:$true] %s30_s19  ;;  %s16_s22 = int_to_ptr.hbm [resolvable:$true] %s15_s22 }
   0x3   :  { %s796_s23 = smov 64   ;;  %s797_s24 = smov 4  }
   0x4   :  { %36 = dma.hbm_to_vmem [thread:$0]  %s29_s17, 1024, %s31_s19, [#allocation6], %s796_s23, %s796_s23, %s797_s24  }
   0x5   :  { %s798_s25 = smov [#allocation3]   ;;  %s41_s29 = sshll.u32 %s863_s2, 4  ;;  %s42_s29 = int_to_ptr.hbm [resolvable:$true] %s41_s29 }
   0x6   :  { %s17_s26 = sshll.u32 %s798_s25, 4  ;;  %s799_s1 = smov [#allocation7]   ;;  %s18_s26 = int_to_ptr.vmem [resolvable:$true] %s17_s26 }
   0x7   :  { %23 = dma.hbm_to_vmem [thread:$0]  %s16_s22, 1024, %s18_s26, [#allocation4], %s796_s23, %s796_s23, %s797_s24  }
   0x8   :  { %s43_s30 = sshll.u32 %s799_s1, 4  ;;  %s44_s30 = int_to_ptr.vmem [resolvable:$true] %s43_s30 }
   0x9   :  { %49 = dma.hbm_to_vmem [thread:$0]  %s42_s29, 1024, %s44_s30, [#allocation6], %s796_s23, %s796_s23, %s797_s24  }
   0xa   :  { %791 = dma.done.wait [#allocation4], 1024  }
   0xb   :  { %792 = vsyncadd [#allocation4], 4294966272 }
   0xc   :  { %793 = dma.done.wait [#allocation6], 2048  }
   0xd   :  { %794 = vsyncadd [#allocation6], 4294965248  ;;  %v641_v0 = vld [vmem:[#allocation7 + $0x38] sm:$0xff]  ;;  %v640_v1 = vld [vmem:[#allocation7 + $0x30] sm:$0xff] }
   0xe   :  { %697 = vmatpush.bf16.msra.mxu2 %v641_v0  ;;  %217 = vmatpush.bf16.msra.mxu0 %v641_v0  ;;  %v639_v2 = vld [vmem:[#allocation7 + $0x28] sm:$0xff]  ;;  %v638_v3 = vld [vmem:[#allocation7 + $0x20] sm:$0xff]  ;;  %v637_v4 = vld [vmem:[#allocation7 + $0x18] sm:$0xff] }
   0xf   :  { %v636_v5 = vld [vmem:[#allocation7 + $0x10] sm:$0xff]  ;;  %v635_v6 = vld [vmem:[#allocation7 + $0x8] sm:$0xff]  ;;  %v634_v7 = vld [vmem:[#allocation7] sm:$0xff] }
  0x10   :  { %v630_v8 = vld [vmem:[#allocation5 + $0x20] sm:$0xff]  ;;  %v631_v10 = vld [vmem:[#allocation5 + $0x28] sm:$0xff]  ;;  %v632_v12 = vld [vmem:[#allocation5 + $0x30] sm:$0xff] }
  0x11   :  { %v626_v9 = vld [vmem:[#allocation5] sm:$0xff]  ;;  %v627_v11 = vld [vmem:[#allocation5 + $0x8] sm:$0xff]  ;;  %v628_v13 = vld [vmem:[#allocation5 + $0x10] sm:$0xff] }
  0x12   :  { %698 = vmatpush.bf16.msra.mxu2 %v640_v1  ;;  %218 = vmatpush.bf16.msra.mxu0 %v640_v1  ;;  %v633_v14 = vld [vmem:[#allocation5 + $0x38] sm:$0xff]  ;;  %v642_v40 = vld [vmem:[#allocation3] sm:$0xff]  ;;  %v643_v42 = vld [vmem:[#allocation3 + $0x8] sm:$0xff] }
  0x13   :  { %v629_v15 = vld [vmem:[#allocation5 + $0x18] sm:$0xff]  ;;  %v646_v41 = vld [vmem:[#allocation3 + $0x20] sm:$0xff]  ;;  %v647_v43 = vld [vmem:[#allocation3 + $0x28] sm:$0xff] }
  0x14   :  { %v644_v44 = vld [vmem:[#allocation3 + $0x10] sm:$0xff]  ;;  %v645_v46 = vld [vmem:[#allocation3 + $0x18] sm:$0xff]  ;;  %v718_v49 = vld [vmem:[%s864_s3] ss:$0 sm:$0xff] }
  0x15   :  { %v648_v45 = vld [vmem:[#allocation3 + $0x30] sm:$0xff]  ;;  %v649_v47 = vld [vmem:[#allocation3 + $0x38] sm:$0xff] }
  0x16   :  { %699 = vmatpush.bf16.msra.mxu2 %v639_v2  ;;  %219 = vmatpush.bf16.msra.mxu0 %v639_v2 }
  0x1a   :  { %700 = vmatpush.bf16.msra.mxu2 %v638_v3  ;;  %220 = vmatpush.bf16.msra.mxu0 %v638_v3 }
  0x1e   :  { %701 = vmatpush.bf16.msra.mxu2 %v637_v4  ;;  %221 = vmatpush.bf16.msra.mxu0 %v637_v4 }
  0x22   :  { %702 = vmatpush.bf16.msra.mxu2 %v636_v5  ;;  %222 = vmatpush.bf16.msra.mxu0 %v636_v5 }
  0x26   :  { %703 = vmatpush.bf16.msra.mxu2 %v635_v6  ;;  %223 = vmatpush.bf16.msra.mxu0 %v635_v6 }
  0x2a   :  { %704 = vmatpush.bf16.msra.mxu2 %v634_v7  ;;  %224 = vmatpush.bf16.msra.mxu0 %v634_v7 }
  0x2d   :  { %245 = vmatmul.bf16.vlgmr.msra.gmra.mxu2 %v630_v8  ;;  %225 = vmatmul.bf16.vlgmr.msra.gmra.mxu0 %v626_v9 }
  0x3d   :  { %250 = vmatmul.bf16.gmra.mxu2 %v631_v10  ;;  %230 = vmatmul.bf16.gmra.mxu0 %v627_v11 }
  0x4d   :  { %255 = vmatmul.bf16.gmra.mxu2 %v632_v12  ;;  %235 = vmatmul.bf16.gmra.mxu0 %v628_v13 }
  0x5d   :  { %260 = vmatmul.bf16.gmra.mxu2 %v633_v14  ;;  %240 = vmatmul.bf16.gmra.mxu0 %v629_v15 }
  0xaa   :  { %v226_v17 = vpop.f32.mrf.mxu0 }
  0xb0   :  { %v246_v16 = vpop.f32.mrf.mxu2 }
  0xb2   :  { %v228_v19 = vpop.f32.mrf.mxu0 }
  0xb3   :  { %v266_v39 = vpack.c.bf16 %v228_v19, %v226_v17 }
  0xb8   :  { %v248_v18 = vpop.f32.mrf.mxu2 }
  0xb9   :  { %v270_v34 = vpack.c.bf16 %v248_v18, %v246_v16 }
  0xba   :  { %v231_v21 = vpop.f32.mrf.mxu0 }
  0xc0   :  { %v251_v20 = vpop.f32.mrf.mxu2 }
  0xc2   :  { %v233_v23 = vpop.f32.mrf.mxu0 }
  0xc3   :  { %v267_v38 = vpack.c.bf16 %v233_v23, %v231_v21 }
  0xc8   :  { %v253_v22 = vpop.f32.mrf.mxu2 }
  0xc9   :  { %v271_v33 = vpack.c.bf16 %v253_v22, %v251_v20 }
  0xca   :  { %v236_v25 = vpop.f32.mrf.mxu0 }
  0xd0   :  { %v256_v24 = vpop.f32.mrf.mxu2 }
  0xd2   :  { %v238_v28 = vpop.f32.mrf.mxu0 }
  0xd3   :  { %v268_v37 = vpack.c.bf16 %v238_v28, %v236_v25 }
  0xd8   :  { %v258_v26 = vpop.f32.mrf.mxu2 }
  0xd9   :  { %v272_v32 = vpack.c.bf16 %v258_v26, %v256_v24 }
  0xda   :  { %v241_v31 = vpop.f32.mrf.mxu0 }
  0xe0   :  { %v261_v27 = vpop.f32.mrf.mxu2 }
  0xe2   :  { %v243_v35 = vpop.f32.mrf.mxu0 }
  0xe3   :  { %v269_v36 = vpack.c.bf16 %v243_v35, %v241_v31 }
  0xe8   :  { %v263_v29 = vpop.f32.mrf.mxu2 }
  0xe9   :  { %v273_v30 = vpack.c.bf16 %v263_v29, %v261_v27 }
  0xeb   :  { %354 = vmatpush.bf16.msra.mxu1 %v273_v30  ;;  %705 = vmatpush.bf16.msra.mxu3 %v273_v30 }
  0xef   :  { %355 = vmatpush.bf16.msra.mxu1 %v272_v32  ;;  %706 = vmatpush.bf16.msra.mxu3 %v272_v32 }
  0xf3   :  { %356 = vmatpush.bf16.msra.mxu1 %v271_v33  ;;  %707 = vmatpush.bf16.msra.mxu3 %v271_v33 }
  0xf7   :  { %357 = vmatpush.bf16.msra.mxu1 %v270_v34  ;;  %708 = vmatpush.bf16.msra.mxu3 %v270_v34 }
  0xfb   :  { %358 = vmatpush.bf16.msra.mxu1 %v269_v36  ;;  %709 = vmatpush.bf16.msra.mxu3 %v269_v36 }
  0xff   :  { %359 = vmatpush.bf16.msra.mxu1 %v268_v37  ;;  %710 = vmatpush.bf16.msra.mxu3 %v268_v37 }
 0x103   :  { %360 = vmatpush.bf16.msra.mxu1 %v267_v38  ;;  %711 = vmatpush.bf16.msra.mxu3 %v267_v38 }
 0x107   :  { %361 = vmatpush.bf16.msra.mxu1 %v266_v39  ;;  %712 = vmatpush.bf16.msra.mxu3 %v266_v39 }
 0x10a   :  { %362 = vmatmul.bf16.vlgmr.msra.gmra.mxu1 %v642_v40  ;;  %382 = vmatmul.bf16.vlgmr.msra.gmra.mxu3 %v646_v41 }
 0x11a   :  { %367 = vmatmul.bf16.gmra.mxu1 %v643_v42  ;;  %387 = vmatmul.bf16.gmra.mxu3 %v647_v43 }
 0x12a   :  { %372 = vmatmul.bf16.gmra.mxu1 %v644_v44  ;;  %392 = vmatmul.bf16.gmra.mxu3 %v648_v45 }
 0x13a   :  { %377 = vmatmul.bf16.gmra.mxu1 %v645_v46  ;;  %397 = vmatmul.bf16.gmra.mxu3 %v649_v47 }
 0x187   :  { %v363_v48 = vpop.f32.mrf.mxu1 }
 0x188   :  { %v458_v51 = vadd.f32 %v718_v49, %v363_v48 }
 0x18a   :  { %v474_v54 = vmax.f32 %v458_v51, 0.0 }
 0x18d   :  { %v383_v50 = vpop.f32.mrf.mxu3 }
 0x18e   :  { %v466_v56 = vadd.f32 %v718_v49, %v383_v50 }
 0x18f   :  { %v365_v52 = vpop.f32.mrf.mxu1 }
 0x190   :  { %v459_v53 = vadd.f32 %v718_v49, %v365_v52  ;;  %v482_v61 = vmax.f32 %v466_v56, 0.0 }
 0x192   :  { %v475_v55 = vmax.f32 %v459_v53, 0.0 }
 0x194   :  { %v653_v57 = vpack.c.bf16 %v475_v55, %v474_v54 }
 0x195   :  { %v385_v58 = vpop.f32.mrf.mxu3 }
 0x196   :  { %654 = vst [vmem:[%s865_s4] sm:$0xff] %v653_v57   ;;  %v467_v59 = vadd.f32 %v718_v49, %v385_v58 }
 0x197   :  { %v368_v60 = vpop.f32.mrf.mxu1 }
 0x198   :  { %v483_v62 = vmax.f32 %v467_v59, 0.0  ;;  %v460_v1 = vadd.f32 %v718_v49, %v368_v60 }
 0x19a   :  { %v673_v63 = vpack.c.bf16 %v483_v62, %v482_v61  ;;  %v476_v4 = vmax.f32 %v460_v1, 0.0 }
 0x19c   :  { %693 = vst [vmem:[%s865_s4 + $0x20] sm:$0xff] %v673_v63  }
 0x19d   :  { %v388_v0 = vpop.f32.mrf.mxu3 }
 0x19e   :  { %v468_v6 = vadd.f32 %v718_v49, %v388_v0 }
 0x19f   :  { %v370_v2 = vpop.f32.mrf.mxu1 }
 0x1a0   :  { %v461_v3 = vadd.f32 %v718_v49, %v370_v2  ;;  %v484_v11 = vmax.f32 %v468_v6, 0.0 }
 0x1a2   :  { %v477_v5 = vmax.f32 %v461_v3, 0.0 }
 0x1a4   :  { %v658_v7 = vpack.c.bf16 %v477_v5, %v476_v4 }
 0x1a5   :  { %v390_v8 = vpop.f32.mrf.mxu3 }
 0x1a6   :  { %690 = vst [vmem:[%s865_s4 + $0x8] sm:$0xff] %v658_v7   ;;  %v469_v9 = vadd.f32 %v718_v49, %v390_v8 }
 0x1a7   :  { %v373_v10 = vpop.f32.mrf.mxu1 }
 0x1a8   :  { %v485_v12 = vmax.f32 %v469_v9, 0.0  ;;  %v462_v15 = vadd.f32 %v718_v49, %v373_v10 }
 0x1aa   :  { %v678_v13 = vpack.c.bf16 %v485_v12, %v484_v11  ;;  %v478_v18 = vmax.f32 %v462_v15, 0.0 }
 0x1ac   :  { %694 = vst [vmem:[%s865_s4 + $0x28] sm:$0xff] %v678_v13  }
 0x1ad   :  { %v393_v14 = vpop.f32.mrf.mxu3 }
 0x1ae   :  { %v470_v20 = vadd.f32 %v718_v49, %v393_v14 }
 0x1af   :  { %v375_v16 = vpop.f32.mrf.mxu1 }
 0x1b0   :  { %v463_v17 = vadd.f32 %v718_v49, %v375_v16  ;;  %v486_v25 = vmax.f32 %v470_v20, 0.0 }
 0x1b2   :  { %v479_v19 = vmax.f32 %v463_v17, 0.0 }
 0x1b4   :  { %v663_v21 = vpack.c.bf16 %v479_v19, %v478_v18 }
 0x1b5   :  { %v395_v22 = vpop.f32.mrf.mxu3 }
 0x1b6   :  { %691 = vst [vmem:[%s865_s4 + $0x10] sm:$0xff] %v663_v21   ;;  %v471_v23 = vadd.f32 %v718_v49, %v395_v22 }
 0x1b7   :  { %v378_v24 = vpop.f32.mrf.mxu1 }
 0x1b8   :  { %v487_v26 = vmax.f32 %v471_v23, 0.0  ;;  %v464_v29 = vadd.f32 %v718_v49, %v378_v24 }
 0x1ba   :  { %v683_v27 = vpack.c.bf16 %v487_v26, %v486_v25  ;;  %v480_v32 = vmax.f32 %v464_v29, 0.0 }
 0x1bc   :  { %695 = vst [vmem:[%s865_s4 + $0x30] sm:$0xff] %v683_v27  }
 0x1bd   :  { %v398_v28 = vpop.f32.mrf.mxu3 }
 0x1be   :  { %v472_v34 = vadd.f32 %v718_v49, %v398_v28 }
 0x1bf   :  { %v380_v30 = vpop.f32.mrf.mxu1 }
 0x1c0   :  { %v465_v31 = vadd.f32 %v718_v49, %v380_v30  ;;  %v488_v38 = vmax.f32 %v472_v34, 0.0 }
 0x1c2   :  { %v481_v33 = vmax.f32 %v465_v31, 0.0 }
 0x1c4   :  { %v668_v35 = vpack.c.bf16 %v481_v33, %v480_v32 }
 0x1c5   :  { %v400_v36 = vpop.f32.mrf.mxu3 }
 0x1c6   :  { %692 = vst [vmem:[%s865_s4 + $0x18] sm:$0xff] %v668_v35   ;;  %v473_v37 = vadd.f32 %v718_v49, %v400_v36 }
 0x1c8   :  { %v489_v39 = vmax.f32 %v473_v37, 0.0 }
 0x1ca   :  { %v688_v40 = vpack.c.bf16 %v489_v39, %v488_v38 }
 0x1cc   :  { %696 = vst [vmem:[%s865_s4 + $0x38] sm:$0xff] %v688_v40  }
 0x1cd   :  { %526 = vsyncpa [#allocation4], 1 }
 0x1ce   :  { %527 = vsyncpa [#allocation6], 1 }

</bundles_post_ra>
